<compile_context>
chip_gen: v6e
topology: v6e:2x2x1
jax: 0.10.0
libtpu: 0.0.40
codegen_flags: <defaults>
</compile_context>

<pallas_src>
import jax
import jax.numpy as jnp
from jax.experimental import pallas as pl
from jax.experimental.pallas import tpu as pltpu

_LANE = 128


def _round_up(x, m):
    return (x + m - 1) // m * m


def _pick_batch_tile(B):
    """Batch tile: 16-row aligned (bf16 sublane packing), minimal padding,
    and >= 2 grid steps once B > 256 so v7x can use both TensorCores."""
    B16 = _round_up(B, 16)
    if B16 <= 256:
        return B16                                # single grid step
    n_steps = max(2, -(-B16 // 512))              # <= ~512 rows per step
    return _round_up(-(-B16 // n_steps), 16)


def _mlp_head_kernel(x_ref, w1_ref, b1_ref, w2_ref, b2_ref, w3_ref, b3_ref,
                     o_ref):
    # x: (TB, D) f32 native layout; cast to bf16 only at the MXU boundary.
    x = x_ref[...].astype(jnp.bfloat16)

    h1 = jnp.dot(x, w1_ref[...], preferred_element_type=jnp.float32)
    h1 = jnp.maximum(h1 + b1_ref[...], 0.0).astype(jnp.bfloat16)

    h2 = jnp.dot(h1, w2_ref[...], preferred_element_type=jnp.float32)
    h2 = jnp.maximum(h2 + b2_ref[...], 0.0)       # stays f32 for the f32 layer 3

    out = jnp.dot(h2, w3_ref[...], preferred_element_type=jnp.float32)
    # bias-add in f32; cast only at the final store (bf16 output halves HBM).
    o_ref[...] = (out + b3_ref[...]).astype(o_ref.dtype)


def classifier_head(x, p, out_features):
    """x: (B, D0) float32; p: pre-folded / pre-padded kernel params."""
    B, D = x.shape
    w1, b1 = p["w1"], p["b1"]
    w2, b2 = p["w2"], p["b2"]
    w3, b3 = p["w3"], p["b3"]
    H1p = w1.shape[1]
    H2p = w2.shape[1]
    Op = w3.shape[1]
    assert w1.shape[0] == D

    TB = _pick_batch_tile(B)
    Bp = _round_up(B, TB)

    # Only the batch dim is padded; feature dim stays native (no lane bloat,
    # no bf16 pre-cast pass over x).
    xp = x if Bp == B else jnp.pad(x, ((0, Bp - B), (0, 0)))

    tile = lambda i: (i, 0)     # batch-tiled arrays
    fixed = lambda i: (0, 0)    # VMEM-resident weights / biases

    out = pl.pallas_call(
        _mlp_head_kernel,
        out_shape=jax.ShapeDtypeStruct((Bp, Op), jnp.bfloat16),
        grid=(Bp // TB,),
        in_specs=[
            pl.BlockSpec((TB, D), tile),
            pl.BlockSpec((D, H1p), fixed),
            pl.BlockSpec((1, H1p), fixed),
            pl.BlockSpec((H1p, H2p), fixed),
            pl.BlockSpec((1, H2p), fixed),
            pl.BlockSpec((H2p, Op), fixed),
            pl.BlockSpec((1, Op), fixed),
        ],
        out_specs=pl.BlockSpec((TB, Op), tile),
        compiler_params=pltpu.CompilerParams(
            dimension_semantics=("parallel",)),
    )(xp, w1, b1, w2, b2, w3, b3)

    # Slice off batch/lane padding; return f32 to match the PyTorch module.
    return out[:B, :out_features].astype(jnp.float32)


def make_raw_params(key, input_size_list, output_size=10):
    """Parameters in PyTorch layout: Linear weight (out, in), BN per-feature."""
    d0, h1, h2 = input_size_list
    ks = jax.random.split(key, 12)

    def lin_w(k, fan_out, fan_in):
        bound = 1.0 / jnp.sqrt(fan_in)
        return jax.random.uniform(k, (fan_out, fan_in), jnp.float32,
                                  -bound, bound)

    return {
        "w1": lin_w(ks[0], h1, d0),                        # linear_1 (bias=False)
        "w2": lin_w(ks[1], h2, h1),                        # linear_2 (bias=False)
        "w3": lin_w(ks[2], output_size, h2),               # linear_3
        "b3": jax.random.uniform(ks[3], (output_size,), jnp.float32,
                                 -1.0 / jnp.sqrt(h2), 1.0 / jnp.sqrt(h2)),
        "g1": 1.0 + 0.1 * jax.random.normal(ks[4], (h1,), jnp.float32),
        "be1": 0.1 * jax.random.normal(ks[5], (h1,), jnp.float32),
        "m1": 0.1 * jax.random.normal(ks[6], (h1,), jnp.float32),
        "v1": jax.random.uniform(ks[7], (h1,), jnp.float32, 0.5, 1.5),
        "g2": 1.0 + 0.1 * jax.random.normal(ks[8], (h2,), jnp.float32),
        "be2": 0.1 * jax.random.normal(ks[9], (h2,), jnp.float32),
        "m2": 0.1 * jax.random.normal(ks[10], (h2,), jnp.float32),
        "v2": jax.random.uniform(ks[11], (h2,), jnp.float32, 0.5, 1.5),
    }


def fold_and_pad(p, eps=1e-5):
    """Fold eval-mode BN into weights, transpose to (in, out), pad the OUTPUT
    (lane) dims to 128. w1/w2 are bf16 (MXU), w3/b3 stay f32 for accuracy.
    The input dim of w1 is kept at its native width (x is fed unpadded)."""

    def pad2(a, r, c):
        return jnp.zeros((r, c), a.dtype).at[:a.shape[0], :a.shape[1]].set(a)

    # y = (h - m) * rsqrt(v+eps) * g + b  ==  h * s + (b - m*s)
    s1 = p["g1"] * jax.lax.rsqrt(p["v1"] + eps)
    sh1 = p["be1"] - p["m1"] * s1
    s2 = p["g2"] * jax.lax.rsqrt(p["v2"] + eps)
    sh2 = p["be2"] - p["m2"] * s2

    w1 = p["w1"].T * s1[None, :]   # (d0, h1), BN1 scale folded into columns
    w2 = p["w2"].T * s2[None, :]   # (h1, h2), BN2 scale folded into columns
    w3 = p["w3"].T                 # (h2, O)
    b3 = p["b3"]

    d0, h1 = w1.shape
    h2 = w2.shape[1]
    o = w3.shape[1]
    h1p, h2p, op = (_round_up(v, _LANE) for v in (h1, h2, o))

    return {
        "w1": pad2(w1, d0, h1p).astype(jnp.bfloat16),   # K dim kept native
        "b1": pad2(sh1[None, :], 1, h1p),
        "w2": pad2(w2, h1p, h2p).astype(jnp.bfloat16),
        "b2": pad2(sh2[None, :], 1, h2p),
        "w3": pad2(w3, h2p, op),                        # f32 final layer
        "b3": pad2(b3[None, :], 1, op),
    }


def reference(x, p, eps=1e-5):
    """Pure-JAX f32 reference of the PyTorch forward (eval-mode BN)."""
    h = x @ p["w1"].T
    h = (h - p["m1"]) * jax.lax.rsqrt(p["v1"] + eps) * p["g1"] + p["be1"]
    h = jnp.maximum(h, 0.0)
    h = h @ p["w2"].T
    h = (h - p["m2"]) * jax.lax.rsqrt(p["v2"] + eps) * p["g2"] + p["be2"]
    h = jnp.maximum(h, 0.0)
    return h @ p["w3"].T + p["b3"]


if __name__ == "__main__":
    key = jax.random.PRNGKey(0)
    kx, kp = jax.random.split(key)

    B = 8
    input_size_list = [32, 64, 32]
    output_size = 10

    x = jax.random.normal(kx, (B, input_size_list[0]), jnp.float32)
    raw = make_raw_params(kp, input_size_list, output_size)
    kernel_params = fold_and_pad(raw)

    out = classifier_head(x, kernel_params, output_size)
    out = jax.block_until_ready(out)

    ref = reference(x, raw)
    assert out.shape == (B, output_size)
    # bf16 layers 1-2 / bf16 output store with f32 accumulation -> relaxed tol.
    assert jnp.allclose(out, ref, atol=3e-2, rtol=3e-2), (
        float(jnp.max(jnp.abs(out - ref))))

    print("KERNEL_OK")
</pallas_src>

<mosaic_0001>
module attributes {stable_mosaic.version = 11 : i64} {
  func.func @_mlp_head_kernel(%arg0: i32, %arg1: memref<16x32xf32, #tpu.memory_space<vmem>>, %arg2: memref<32x128xbf16, #tpu.memory_space<vmem>>, %arg3: memref<1x128xf32, #tpu.memory_space<vmem>>, %arg4: memref<128x128xbf16, #tpu.memory_space<vmem>>, %arg5: memref<1x128xf32, #tpu.memory_space<vmem>>, %arg6: memref<128x128xf32, #tpu.memory_space<vmem>>, %arg7: memref<1x128xf32, #tpu.memory_space<vmem>>, %arg8: memref<16x128xbf16, #tpu.memory_space<vmem>>) attributes {dimension_semantics = [#tpu.dimension_semantics<parallel>], iteration_bounds = array<i64: 1>, scalar_prefetch = 0 : i64, scratch_operands = 0 : i64, tpu.core_type = #tpu.core_type<tc>, window_params = [{transform_indices = @transform_0, window_bounds = array<i64: 16, 32>}, {pipeline_mode = #tpu.pipeline_mode<synchronous>, transform_indices = @transform_1, window_bounds = array<i64: 32, 128>}, {pipeline_mode = #tpu.pipeline_mode<synchronous>, transform_indices = @transform_2, window_bounds = array<i64: 1, 128>}, {pipeline_mode = #tpu.pipeline_mode<synchronous>, transform_indices = @transform_3, window_bounds = array<i64: 128, 128>}, {pipeline_mode = #tpu.pipeline_mode<synchronous>, transform_indices = @transform_4, window_bounds = array<i64: 1, 128>}, {pipeline_mode = #tpu.pipeline_mode<synchronous>, transform_indices = @transform_5, window_bounds = array<i64: 128, 128>}, {pipeline_mode = #tpu.pipeline_mode<synchronous>, transform_indices = @transform_6, window_bounds = array<i64: 1, 128>}, {transform_indices = @transform_7, window_bounds = array<i64: 16, 128>}]} {
    %c0 = arith.constant 0 : index
    %c0_0 = arith.constant 0 : index
    %0 = vector.load %arg1[%c0, %c0_0] : memref<16x32xf32, #tpu.memory_space<vmem>>, vector<16x32xf32>
    %1 = arith.truncf %0 : vector<16x32xf32> to vector<16x32xbf16>
    %c0_1 = arith.constant 0 : index
    %c0_2 = arith.constant 0 : index
    %2 = vector.load %arg2[%c0_1, %c0_2] : memref<32x128xbf16, #tpu.memory_space<vmem>>, vector<32x128xbf16>
    %cst = arith.constant dense<0.000000e+00> : vector<16x128xf32>
    %3 = tpu.matmul %1, %2, %cst {dimension_numbers = #tpu.dot_dimension_numbers<[1], [0], [0], [1], [0, 0, 1, 1], [], []>} : vector<16x32xbf16>, vector<32x128xbf16>, vector<16x128xf32> -> vector<16x128xf32>
    %c0_3 = arith.constant 0 : index
    %c0_4 = arith.constant 0 : index
    %4 = vector.load %arg3[%c0_3, %c0_4] : memref<1x128xf32, #tpu.memory_space<vmem>>, vector<1x128xf32>
    %5 = vector.broadcast %4 : vector<1x128xf32> to vector<16x128xf32>
    %6 = arith.addf %3, %5 : vector<16x128xf32>
    %cst_5 = arith.constant 0.000000e+00 : f32
    %7 = vector.broadcast %cst_5 : f32 to vector<16x128xf32>
    %8 = arith.maximumf %6, %7 : vector<16x128xf32>
    %9 = arith.truncf %8 : vector<16x128xf32> to vector<16x128xbf16>
    %c0_6 = arith.constant 0 : index
    %c0_7 = arith.constant 0 : index
    %10 = vector.load %arg4[%c0_6, %c0_7] : memref<128x128xbf16, #tpu.memory_space<vmem>>, vector<128x128xbf16>
    %cst_8 = arith.constant dense<0.000000e+00> : vector<16x128xf32>
    %11 = tpu.matmul %9, %10, %cst_8 {dimension_numbers = #tpu.dot_dimension_numbers<[1], [0], [0], [1], [0, 0, 1, 1], [], []>} : vector<16x128xbf16>, vector<128x128xbf16>, vector<16x128xf32> -> vector<16x128xf32>
    %c0_9 = arith.constant 0 : index
    %c0_10 = arith.constant 0 : index
    %12 = vector.load %arg5[%c0_9, %c0_10] : memref<1x128xf32, #tpu.memory_space<vmem>>, vector<1x128xf32>
    %13 = vector.broadcast %12 : vector<1x128xf32> to vector<16x128xf32>
    %14 = arith.addf %11, %13 : vector<16x128xf32>
    %cst_11 = arith.constant 0.000000e+00 : f32
    %15 = vector.broadcast %cst_11 : f32 to vector<16x128xf32>
    %16 = arith.maximumf %14, %15 : vector<16x128xf32>
    %c0_12 = arith.constant 0 : index
    %c0_13 = arith.constant 0 : index
    %17 = vector.load %arg6[%c0_12, %c0_13] : memref<128x128xf32, #tpu.memory_space<vmem>>, vector<128x128xf32>
    %cst_14 = arith.constant dense<0.000000e+00> : vector<16x128xf32>
    %18 = tpu.matmul %16, %17, %cst_14 {dimension_numbers = #tpu.dot_dimension_numbers<[1], [0], [0], [1], [0, 0, 1, 1], [], []>} : vector<16x128xf32>, vector<128x128xf32>, vector<16x128xf32> -> vector<16x128xf32>
    %c0_15 = arith.constant 0 : index
    %c0_16 = arith.constant 0 : index
    %19 = vector.load %arg7[%c0_15, %c0_16] : memref<1x128xf32, #tpu.memory_space<vmem>>, vector<1x128xf32>
    %20 = vector.broadcast %19 : vector<1x128xf32> to vector<16x128xf32>
    %21 = arith.addf %18, %20 : vector<16x128xf32>
    %22 = arith.truncf %21 : vector<16x128xf32> to vector<16x128xbf16>
    %c0_17 = arith.constant 0 : index
    %c0_18 = arith.constant 0 : index
    %23 = vector.load %arg8[%c0_17, %c0_18] : memref<16x128xbf16, #tpu.memory_space<vmem>>, vector<16x128xbf16>
    tpu.vector_store %arg8[%c0_17, %c0_18], %22 {strides = array<i32>} : memref<16x128xbf16, #tpu.memory_space<vmem>>, vector<16x128xbf16>,
    return
  }
  func.func @transform_0(%arg0: i32) -> (i32, i32) {
    %c0_i32 = arith.constant 0 : i32
    %c0_i32_0 = arith.constant 0 : i32
    return %arg0, %c0_i32 : i32, i32
  }
  func.func @transform_1(%arg0: i32) -> (i32, i32) {
    %c0_i32 = arith.constant 0 : i32
    %c0_i32_0 = arith.constant 0 : i32
    %c0_i32_1 = arith.constant 0 : i32
    return %c0_i32, %c0_i32_0 : i32, i32
  }
  func.func @transform_2(%arg0: i32) -> (i32, i32) {
    %c0_i32 = arith.constant 0 : i32
    %c0_i32_0 = arith.constant 0 : i32
    %c0_i32_1 = arith.constant 0 : i32
    return %c0_i32, %c0_i32_0 : i32, i32
  }
  func.func @transform_3(%arg0: i32) -> (i32, i32) {
    %c0_i32 = arith.constant 0 : i32
    %c0_i32_0 = arith.constant 0 : i32
    %c0_i32_1 = arith.constant 0 : i32
    return %c0_i32, %c0_i32_0 : i32, i32
  }
  func.func @transform_4(%arg0: i32) -> (i32, i32) {
    %c0_i32 = arith.constant 0 : i32
    %c0_i32_0 = arith.constant 0 : i32
    %c0_i32_1 = arith.constant 0 : i32
    return %c0_i32, %c0_i32_0 : i32, i32
  }
  func.func @transform_5(%arg0: i32) -> (i32, i32) {
    %c0_i32 = arith.constant 0 : i32
    %c0_i32_0 = arith.constant 0 : i32
    %c0_i32_1 = arith.constant 0 : i32
    return %c0_i32, %c0_i32_0 : i32, i32
  }
  func.func @transform_6(%arg0: i32) -> (i32, i32) {
    %c0_i32 = arith.constant 0 : i32
    %c0_i32_0 = arith.constant 0 : i32
    %c0_i32_1 = arith.constant 0 : i32
    return %c0_i32, %c0_i32_0 : i32, i32
  }
  func.func @transform_7(%arg0: i32) -> (i32, i32) {
    %c0_i32 = arith.constant 0 : i32
    %c0_i32_0 = arith.constant 0 : i32
    return %arg0, %c0_i32 : i32, i32
  }
}

</mosaic_0001>

<bundles_post_ra>
// kernel: tpu_custom_call.1
= control target key start
LH: loop header
LB: loop body
LE: loop exit
PB: predicated region body
PF: predicated region fallthrough
CT: control target
= control target key end

     0   :  { %12 = vsyncpa [#allocation3], 0  ;;  %s727_s0 = inlined_call_operand.hbm [shape: f32[16,32], index: 0, kind: input, shape index: {}]   ;;  %s728_s1 = inlined_call_operand.hbm [shape: bf16[32,128], index: 1, kind: input, shape index: {}]   ;;  %s729_s2 = inlined_call_operand.vmem [shape: f32[1,128], index: 2, kind: input, shape index: {}]   ;;  %s730_s3 = inlined_call_operand.hbm [shape: bf16[128,128], index: 3, kind: input, shape index: {}]   ;;  %s731_s4 = inlined_call_operand.vmem [shape: f32[1,128], index: 4, kind: input, shape index: {}]   ;;  %s732_s5 = inlined_call_operand.hbm [shape: f32[128,128], index: 5, kind: input, shape index: {}]   ;;  %s733_s6 = inlined_call_operand.vmem [shape: f32[1,128], index: 6, kind: input, shape index: {}]   ;;  %s734_s7 = inlined_call_operand.hbm [shape: bf16[16,128], index: 7, kind: output, shape index: {}]  }
   0x1   :  { %13 = vsyncpa [#allocation6], 0 }
   0x2   :  { %14 = vsyncpa [#allocation9], 0 }
   0x3   :  { %15 = vsyncpa [#allocation4], 0  ;;  %s643_s24 = smov [#allocation5]  }
   0x4   :  { %s33_s25 = sshll.u32 %s643_s24, 4  ;;  %s34_s25 = int_to_ptr.vmem [resolvable:$true] %s33_s25 }
   0x5   :  { %s543_s26 = scalar_lea.vmem %s34_s25, 256  ;;  %p548_p1 = scmp.lt.s32.totalorder %s34_s25, %s34_s25 }
   0x6   :  { %p544_p0 = scmp.ne.s32.totalorder %s34_s25, %s543_s26  ;;  %p549_p2 = scmp.lt.s32.totalorder %s543_s26, %s543_s26 }
   0x8   :  { %p550_p3 = por %p549_p2, %p548_p1 }
   0xa   :  { %p551_p4 = pnand %p550_p3, %p544_p0 }
   0xc   :  { %554 = shalt.err (!%p551_p4)
}
   0xd   :  { %s644_s27 = smov 64   ;;  %s645_s28 = smov 4  }
   0xe   :  { %39 = dma.hbm_to_vmem [thread:$0]  %s728_s1, 256, %s34_s25, [#allocation6], %s644_s27, %s644_s27, %s645_s28  }
   0xf   :  { %s646_s8 = smov [#allocation2]  }
  0x10   :  { %s21_s9 = sshll.u32 %s646_s8, 4  ;;  %s22_s9 = int_to_ptr.vmem [resolvable:$true] %s21_s9 }
  0x11   :  { %s563_s10 = scalar_lea.vmem %s22_s9, 256  ;;  %p568_p6 = scmp.lt.s32.totalorder %s22_s9, %s22_s9 }
  0x12   :  { %p564_p5 = scmp.ne.s32.totalorder %s22_s9, %s563_s10  ;;  %p569_p7 = scmp.lt.s32.totalorder %s563_s10, %s563_s10 }
  0x14   :  { %p570_p8 = por %p569_p7, %p568_p6 }
  0x16   :  { %p571_p9 = pnand %p570_p8, %p564_p5 }
  0x18   :  { %574 = shalt.err (!%p571_p9)
}
  0x19   :  { %s647_s11 = smov 128   ;;  %s648_s12 = smov 8  }
  0x1a   :  { %27 = dma.hbm_to_vmem [thread:$0]  %s727_s0, 256, %s22_s9, [#allocation3], %s647_s11, %s647_s11, %s648_s12  }
  0x1b   :  { %s649_s15 = smov [#allocation7]   ;;  %s650_s17 = smov [#allocation8]  }
  0x1c   :  { %s47_s16 = sshll.u32 %s649_s15, 4  ;;  %s61_s1 = sshll.u32 %s650_s17, 4  ;;  %s48_s16 = int_to_ptr.vmem [resolvable:$true] %s47_s16  ;;  %s62_s1 = int_to_ptr.vmem [resolvable:$true] %s61_s1 }
  0x1d   :  { %s583_s18 = scalar_lea.vmem %s48_s16, 1024  ;;  %p588_p11 = scmp.lt.s32.totalorder %s48_s16, %s48_s16 }
  0x1e   :  { %p584_p10 = scmp.ne.s32.totalorder %s48_s16, %s583_s18  ;;  %p589_p12 = scmp.lt.s32.totalorder %s583_s18, %s583_s18 }
  0x20   :  { %p590_p13 = por %p589_p12, %p588_p11 }
  0x22   :  { %p591_p0 = pnand %p590_p13, %p584_p10 }
  0x24   :  { %594 = shalt.err (!%p591_p0)
}
  0x25   :  { %53 = dma.hbm_to_vmem [thread:$0]  %s730_s3, 1024, %s48_s16, [#allocation6], %s644_s27, %s644_s27, %s645_s28  }
  0x26   :  { %s603_s0 = scalar_lea.vmem %s62_s1, 2048  ;;  %p608_p2 = scmp.lt.s32.totalorder %s62_s1, %s62_s1 }
  0x27   :  { %p604_p1 = scmp.ne.s32.totalorder %s62_s1, %s603_s0  ;;  %p609_p3 = scmp.lt.s32.totalorder %s603_s0, %s603_s0 }
  0x29   :  { %p610_p4 = por %p609_p3, %p608_p2 }
  0x2b   :  { %p611_p5 = pnand %p610_p4, %p604_p1 }
  0x2d   :  { %614 = shalt.err (!%p611_p5)
}
  0x2e   :  { %67 = dma.hbm_to_vmem [thread:$0]  %s732_s5, 2048, %s62_s1, [#allocation9], %s647_s11, %s647_s11, %s648_s12  }
  0x2f   :  { %635 = dma.done.wait [#allocation3], 256  }
  0x30   :  { %636 = vsyncadd [#allocation3], 4294967040 }
  0x31   :  { %637 = dma.done.wait [#allocation6], 1280  }
  0x32   :  { %638 = vsyncadd [#allocation6], 4294966016 }
  0x33   :  { %639 = dma.done.wait [#allocation9], 2048  }
  0x34   :  { %640 = vsyncadd [#allocation9], 4294965248  ;;  %v651_v0 = vmov 0.0   ;;  %vm652_vm0 = vmmov 0   ;;  %v525_v1 = vld [vmem:[#allocation5 + $0x8] sm:$0xff]   ;;  %v526_v2 = vld [vmem:[#allocation5] sm:$0xff]  }
  0x35   :  { %451 = vmatprep.subr.bf16.mxu0 %v651_v0  ;;  %455 = vmatprep.mubr.msk.bf16.mxu0 %vm652_vm0, %v651_v0  ;;  %v83_v3 = vld [vmem:[#allocation2] sm:$0xff]  ;;  %v84_v4 = vld [vmem:[#allocation2 + $0x8] sm:$0xff]  ;;  %v527_v5 = vld [vmem:[#allocation7 + $0x38] sm:$0xff]   ;;  %vm109_vm1 = vcmask 261120   ;;  %s653_s26 = smov [#allocation10]  }
  0x36   :  { %459 = vmatprep.subr.bf16.mxu1 %v651_v0  ;;  %475 = vmatprep.mubr.msk.bf16.mxu1 %vm652_vm0, %v651_v0  ;;  %v85_v6 = vpack.c.bf16 %v84_v4, %v83_v3  ;;  %v528_v7 = vld [vmem:[#allocation7 + $0x30] sm:$0xff]   ;;  %v529_v8 = vld [vmem:[#allocation7 + $0x28] sm:$0xff]   ;;  %v530_v9 = vld [vmem:[#allocation7 + $0x20] sm:$0xff]   ;;  %s384_s29 = sshll.u32 %s653_s26, 4  ;;  %s385_s29 = int_to_ptr.vmem [resolvable:$true] %s384_s29 }
  0x37   :  { %452 = vmatpush3.bf16.msra.mxu0 %v525_v1  ;;  %460 = vmatpush3.bf16.msra.mxu1 %v527_v5  ;;  %v531_v10 = vld [vmem:[#allocation7 + $0x18] sm:$0xff]   ;;  %v532_v11 = vld [vmem:[#allocation7 + $0x10] sm:$0xff]   ;;  %v533_v12 = vld [vmem:[#allocation7 + $0x8] sm:$0xff]   ;;  %p620_p7 = scmp.lt.s32.totalorder %s385_s29, %s385_s29 }
  0x38   :  { %453 = vmatprep.subr.bf16.mxu0 %v651_v0  ;;  %461 = vmatprep.subr.bf16.mxu1 %v651_v0  ;;  %v534_v13 = vld [vmem:[#allocation7] sm:$0xff]   ;;  %v286_v14 = vld [vmem:[#allocation8 + $0x78] sm:$0xff]  ;;  %v285_v15 = vld [vmem:[#allocation8 + $0x70] sm:$0xff] }
  0x39   :  { %v284_v16 = vld [vmem:[#allocation8 + $0x68] sm:$0xff]  ;;  %v283_v17 = vld [vmem:[#allocation8 + $0x60] sm:$0xff]  ;;  %v282_v18 = vld [vmem:[#allocation8 + $0x58] sm:$0xff] }
  0x3a   :  { %v281_v19 = vld [vmem:[#allocation8 + $0x50] sm:$0xff]  ;;  %v280_v20 = vld [vmem:[#allocation8 + $0x48] sm:$0xff]  ;;  %v279_v21 = vld [vmem:[#allocation8 + $0x40] sm:$0xff] }
  0x3b   :  { %454 = vmatpush3.bf16.msra.mxu0 %v526_v2  ;;  %462 = vmatpush3.bf16.msra.mxu1 %v528_v7  ;;  %v278_v22 = vld [vmem:[#allocation8 + $0x38] sm:$0xff]  ;;  %v277_v23 = vld [vmem:[#allocation8 + $0x30] sm:$0xff]  ;;  %v276_v24 = vld [vmem:[#allocation8 + $0x28] sm:$0xff] }
  0x3c   :  { %463 = vmatprep.subr.bf16.mxu1 %v651_v0  ;;  %479 = vmatprep.subr.mxu0 %v286_v14  ;;  %v275_v25 = vld [vmem:[#allocation8 + $0x20] sm:$0xff]  ;;  %v274_v36 = vld [vmem:[#allocation8 + $0x18] sm:$0xff]  ;;  %v273_v37 = vld [vmem:[#allocation8 + $0x10] sm:$0xff] }
  0x3d   :  { %v398_v26 = vld [vmem:[%s729_s2] ss:$0 sm:$0xff]  ;;  %v272_v38 = vld [vmem:[#allocation8 + $0x8] sm:$0xff] }
  0x3e   :  { %456 = vmatmul.mubr.msk.bf16.vlgmr.msra.gmra.mxu0 %vm109_vm1, %v85_v6  ;;  %v271_v39 = vld [vmem:[#allocation8] sm:$0xff] }
  0x3f   :  { %464 = vmatpush3.bf16.msra.mxu1 %v529_v8  ;;  %480 = vmatpush3.msra.mxu0 %v286_v14  ;;  %v402_v40 = vld [vmem:[%s731_s4] ss:$0 sm:$0xff]  ;;  %s615_s4 = scalar_lea.vmem %s385_s29, 128 }
  0x40   :  { %465 = vmatprep.subr.bf16.mxu1 %v651_v0  ;;  %481 = vmatprep.subr.mxu0 %v285_v15  ;;  %v411_v50 = vld [vmem:[%s733_s6] ss:$0 sm:$0xff]  ;;  %p616_p6 = scmp.ne.s32.totalorder %s385_s29, %s615_s4  ;;  %p621_p8 = scmp.lt.s32.totalorder %s615_s4, %s615_s4 }
  0x41   :  { %482 = vmatpush3.msra.mxu0 %v285_v15 }
  0x42   :  { %483 = vmatprep.subr.mxu0 %v284_v16  ;;  %p622_p9 = por %p621_p8, %p620_p7 }
  0x43   :  { %466 = vmatpush3.bf16.msra.mxu1 %v530_v9  ;;  %484 = vmatpush3.msra.mxu0 %v284_v16 }
  0x44   :  { %467 = vmatprep.subr.bf16.mxu1 %v651_v0  ;;  %485 = vmatprep.subr.mxu0 %v283_v17  ;;  %p623_p10 = pnand %p622_p9, %p616_p6 }
  0x45   :  { %486 = vmatpush3.msra.mxu0 %v283_v17 }
  0x46   :  { %487 = vmatprep.subr.mxu0 %v282_v18 }
  0x47   :  { %468 = vmatpush3.bf16.msra.mxu1 %v531_v10  ;;  %488 = vmatpush3.msra.mxu0 %v282_v18 }
  0x48   :  { %469 = vmatprep.subr.bf16.mxu1 %v651_v0  ;;  %489 = vmatprep.subr.mxu0 %v281_v19 }
  0x49   :  { %490 = vmatpush3.msra.mxu0 %v281_v19 }
  0x4a   :  { %491 = vmatprep.subr.mxu0 %v280_v20 }
  0x4b   :  { %470 = vmatpush3.bf16.msra.mxu1 %v532_v11  ;;  %492 = vmatpush3.msra.mxu0 %v280_v20 }
  0x4c   :  { %471 = vmatprep.subr.bf16.mxu1 %v651_v0  ;;  %493 = vmatprep.subr.mxu0 %v279_v21 }
  0x4d   :  { %494 = vmatpush3.msra.mxu0 %v279_v21 }
  0x4e   :  { %495 = vmatprep.subr.mxu0 %v278_v22 }
  0x4f   :  { %472 = vmatpush3.bf16.msra.mxu1 %v533_v12  ;;  %496 = vmatpush3.msra.mxu0 %v278_v22 }
  0x50   :  { %473 = vmatprep.subr.bf16.mxu1 %v651_v0  ;;  %497 = vmatprep.subr.mxu0 %v277_v23 }
  0x51   :  { %498 = vmatpush3.msra.mxu0 %v277_v23 }
  0x52   :  { %499 = vmatprep.subr.mxu0 %v276_v24 }
  0x53   :  { %474 = vmatpush3.bf16.msra.mxu1 %v534_v13  ;;  %500 = vmatpush3.msra.mxu0 %v276_v24 }
  0x54   :  { %501 = vmatprep.subr.mxu0 %v275_v25 }
  0x55   :  { %502 = vmatpush3.msra.mxu0 %v275_v25 }
  0x56   :  { %503 = vmatprep.subr.mxu0 %v274_v36 }
  0x57   :  { %504 = vmatpush3.msra.mxu0 %v274_v36 }
  0x58   :  { %505 = vmatprep.subr.mxu0 %v273_v37 }
  0x59   :  { %506 = vmatpush3.msra.mxu0 %v273_v37 }
  0x5a   :  { %507 = vmatprep.subr.mxu0 %v272_v38 }
  0x5b   :  { %508 = vmatpush3.msra.mxu0 %v272_v38 }
  0x5c   :  { %509 = vmatprep.subr.mxu0 %v271_v39 }
  0x5d   :  { %510 = vmatpush3.msra.mxu0 %v271_v39 }
  0xfe   :  { %v147_v27 = vpop.f32.mrf.mxu0 }
  0xff   :  { %v148_v29 = vadd.f32 %v398_v26, %v147_v27 }
 0x100   :  { %v457_v28 = vpop.f32.mrf.mxu0 }
 0x101   :  { %v154_v33 = vmax.f32 %v148_v29, 0.0 }
 0x102   :  { %v150_v30 = vpop.f32.mrf.mxu0 }
 0x103   :  { %v151_v31 = vadd.f32 %v398_v26, %v150_v30 }
 0x104   :  { %v458_v32 = vpop.f32.mrf.mxu0 }
 0x105   :  { %v155_v34 = vmax.f32 %v151_v31, 0.0 }
 0x107   :  { %v156_v35 = vpack.c.bf16 %v155_v34, %v154_v33 }
 0x109   :  { %476 = vmatmul.mubr.bf16.vlgmr.msra.gmra.mxu1 %v156_v35 }
 0x1c9   :  { %v262_v41 = vpop.f32.mrf.mxu1 }
 0x1ca   :  { %v263_v42 = vadd.f32 %v402_v40, %v262_v41 }
 0x1cb   :  { %v477_v43 = vpop.f32.mrf.mxu1 }
 0x1cc   :  { %v269_v44 = vmax.f32 %v263_v42, 0.0 }
 0x1cd   :  { %v265_v45 = vpop.f32.mrf.mxu1 }
 0x1ce   :  { %v266_v46 = vadd.f32 %v402_v40, %v265_v45  ;;  %511 = vmatprep.mubr.f32.mxu0 %v269_v44 }
 0x1cf   :  { %v478_v47 = vpop.f32.mrf.mxu1 }
 0x1d0   :  { %v270_v48 = vmax.f32 %v266_v46, 0.0 }
 0x1d2   :  { %512 = vmatmul.mubr.f32.vlgmr.msra.gmra.mxu0 %v270_v48 }
 0x292   :  { %v513_v49 = vpop.f32.mrf.mxu0 }
 0x293   :  { %v366_v52 = vadd.f32 %v513_v49, %v411_v50 }
 0x294   :  { %v360_v51 = vpop.f32.mrf.mxu0 }
 0x295   :  { %v361_v53 = vadd.f32 %v411_v50, %v360_v51 }
 0x297   :  { %v419_v54 = vpack.c.bf16 %v366_v52, %v361_v53 }
 0x299   :  { %420 = vst [vmem:[#allocation10] sm:$0xff] %v419_v54  }
 0x29a   :  { %626 = shalt.err (!%p623_p10)
}
 0x29b   :  { %390 = dma.vmem_to_hbm [thread:$0]  %s385_s29, 128, %s734_s7, [#allocation4], %s644_s27, %s644_s27, %s645_s28  }
 0x29c   :  { %641 = dma.done.wait [#allocation4], 128  }
 0x29d   :  { %642 = vsyncadd [#allocation4], 4294967168 }
 0x29e   :  { %394 = vsyncpa [#allocation3], 1 }
 0x29f   :  { %395 = vsyncpa [#allocation6], 1 }
 0x2a0   :  { %396 = vsyncpa [#allocation9], 1 }
 0x2a1   :  { %397 = vsyncpa [#allocation4], 1 }

</bundles_post_ra>
